<compile_context>
chip_gen: v7x
topology: tpu7x:2x2x1
jax: 0.10.0
libtpu: 0.0.40
codegen_flags: <defaults>
</compile_context>

<pallas_src>
import functools

import jax
import jax.numpy as jnp
from jax import lax
from jax.experimental import pallas as pl
from jax.experimental.pallas import tpu as pltpu


# ---------------------------------------------------------------------------
# Kernel: one pixel-tile of the streamed Lovasz-Softmax loss.
#   gts_ref  : (Cp, 1) f32   per-class total foreground count (global)
#   err_ref  : (Cp, T) f32   per-class errors, globally sorted descending
#   tgt_ref  : (Cp, T) i32   labels gathered with the same per-class permutation
#   loss_ref : (Cp, 1) f32   per-class loss accumulator (resident output)
#   carry_cum: (Cp, 1) f32   running cumsum(fg) carried across tiles
#   carry_jac: (Cp, 1) f32   last jaccard value of the previous tile
# ---------------------------------------------------------------------------
def _lovasz_kernel(gts_ref, err_ref, tgt_ref, loss_ref, carry_cum, carry_jac):
    k = pl.program_id(0)

    @pl.when(k == 0)
    def _init():
        loss_ref[...] = jnp.zeros_like(loss_ref)
        carry_cum[...] = jnp.zeros_like(carry_cum)
        carry_jac[...] = jnp.zeros_like(carry_jac)

    err = err_ref[...]                                   # (Cp, T) f32
    tgt = tgt_ref[...]                                   # (Cp, T) i32
    cp, t = err.shape

    cls = lax.broadcasted_iota(jnp.int32, (cp, t), 0)    # class id == sublane idx
    lane = lax.broadcasted_iota(jnp.int32, (cp, t), 1)   # pixel offset in tile

    # Reconstruct the one-hot foreground mask in-register (VPU compare + cast).
    fg = (tgt == cls).astype(jnp.float32)

    # Inclusive cumsum along lanes: Hillis-Steele scan, log2(T) pltpu.roll (XLU).
    cum = fg
    s = 1
    while s < t:
        cum = cum + jnp.where(lane >= s, pltpu.roll(cum, s, axis=1), 0.0)
        s *= 2

    cum_fg = cum + carry_cum[...]        # global cumsum(fg) up to each pixel
    prev_jac = carry_jac[...]            # (Cp, 1)

    gts = gts_ref[...]                   # (Cp, 1)
    pos = (k * t).astype(jnp.float32) + lane.astype(jnp.float32)  # global index
    intersection = gts - cum_fg
    union = gts + (pos + 1.0) - cum_fg   # == gts + cumsum(1 - fg)  (>= 1 always)
    jaccard = 1.0 - intersection / union

    # lovasz_grad: first difference of jaccard. Lane 0 uses the carried last
    # jaccard of the previous tile (zero on the first tile -> grad[0]=jaccard[0]).
    shifted = pltpu.roll(jaccard, 1, axis=1)
    grad = jaccard - jnp.where(lane == 0, prev_jac, shifted)

    loss_ref[...] += jnp.sum(err * grad, axis=1, keepdims=True)

    carry_cum[...] = cum_fg[:, t - 1 : t]
    carry_jac[...] = jaccard[:, t - 1 : t]


def _lovasz_pallas(gts, errors_sorted, tgt_sorted, tile_p):
    cp, pp = errors_sorted.shape
    n_tiles = pp // tile_p
    return pl.pallas_call(
        _lovasz_kernel,
        out_shape=jax.ShapeDtypeStruct((cp, 1), jnp.float32),
        grid_spec=pltpu.PrefetchScalarGridSpec(
            num_scalar_prefetch=0,
            grid=(n_tiles,),
            in_specs=[
                pl.BlockSpec((cp, 1), lambda k: (0, 0)),        # gts (resident)
                pl.BlockSpec((cp, tile_p), lambda k: (0, k)),   # errors_sorted
                pl.BlockSpec((cp, tile_p), lambda k: (0, k)),   # tgt_sorted
            ],
            out_specs=pl.BlockSpec((cp, 1), lambda k: (0, 0)),  # loss accumulator
            scratch_shapes=[
                pltpu.VMEM((cp, 1), jnp.float32),   # carry: running cumsum(fg)
                pltpu.VMEM((cp, 1), jnp.float32),   # carry: last jaccard value
            ],
        ),
        compiler_params=pltpu.CompilerParams(
            dimension_semantics=("arbitrary",),     # carry across pixel tiles
        ),
    )(gts, errors_sorted, tgt_sorted)


# ---------------------------------------------------------------------------
# Wrapper: Lovasz_loss.forward(inputs, targets)
# ---------------------------------------------------------------------------
def lovasz_loss(probs, targets, *, tile_p=None):
    """probs: (N, C, H, W) f32 class probabilities; targets: (N, H, W) int."""
    N, C, H, W = probs.shape
    P = N * H * W
    cpad = ((C + 7) // 8) * 8

    # Class-major (C, P) slab in one relayout; the pixel axis stays lane-dense.
    probs_cp = probs.reshape(N, C, H * W).transpose(1, 0, 2).reshape(C, P)
    tgt_flat = targets.reshape(P).astype(jnp.int32)

    cls_ids = jnp.arange(C, dtype=jnp.int32)
    fg = (tgt_flat[None, :] == cls_ids[:, None]).astype(jnp.float32)   # (C, P)
    errors = jnp.abs(fg - probs_cp)                                    # (C, P)
    gts = jnp.sum(fg, axis=1)                                          # (C,)

    # Pad the class axis to a sublane multiple; padded rows contribute 0 loss.
    errors = jnp.pad(errors, ((0, cpad - C), (0, 0)))
    gts = jnp.pad(gts, (0, cpad - C)).reshape(cpad, 1).astype(jnp.float32)

    # TODO(synk): per-class descending sort (torch.sort) has no Pallas/Mosaic
    # primitive; it remains XLA argsort + gather glue around the kernel.
    perm = jnp.argsort(-errors, axis=1)
    errors_sorted = jnp.take_along_axis(errors, perm, axis=1)
    tgt_sorted = jnp.take_along_axis(
        jnp.broadcast_to(tgt_flat[None, :], (cpad, P)), perm, axis=1)

    # Pixel-axis tiling. Pad P so it divides evenly; padded pixels carry
    # error 0 and label -1 (never foreground), so they contribute exactly 0.
    if tile_p is None:
        tile_p = 2048
    tile_p = min(tile_p, ((P + 127) // 128) * 128)
    tile_p = ((tile_p + 127) // 128) * 128
    p_pad = ((P + tile_p - 1) // tile_p) * tile_p
    if p_pad != P:
        errors_sorted = jnp.pad(errors_sorted, ((0, 0), (0, p_pad - P)))
        tgt_sorted = jnp.pad(tgt_sorted, ((0, 0), (0, p_pad - P)),
                             constant_values=-1)

    losses = _lovasz_pallas(gts, errors_sorted, tgt_sorted, tile_p)    # (cpad, 1)

    # reduction='mean' over the real classes (padded classes are exactly 0).
    return jnp.mean(losses[:C, 0])


# ---------------------------------------------------------------------------
# Pure-JAX reference (mirrors the PyTorch LovaszSoftmax forward) for self-check.
# ---------------------------------------------------------------------------
def _lovasz_ref(probs, targets):
    N, C, H, W = probs.shape
    P = N * H * W
    probs_flat = jnp.transpose(probs, (0, 2, 3, 1)).reshape(P, C)
    labels = targets.reshape(P)
    losses = []
    for c in range(C):
        fg = (labels == c).astype(jnp.float32)
        errs = jnp.abs(fg - probs_flat[:, c])
        perm = jnp.argsort(-errs)
        errs_s = errs[perm]
        fg_s = fg[perm]
        gts = jnp.sum(fg_s)
        inter = gts - jnp.cumsum(fg_s)
        union = gts + jnp.cumsum(1.0 - fg_s)
        jac = 1.0 - inter / union
        grad = jnp.concatenate([jac[:1], jac[1:] - jac[:-1]])
        losses.append(jnp.dot(errs_s, grad))
    return jnp.mean(jnp.stack(losses))


if __name__ == "__main__":
    key = jax.random.PRNGKey(0)
    k1, k2 = jax.random.split(key)

    N, C, H, W = 2, 4, 16, 16
    logits = jax.random.normal(k1, (N, C, H, W), dtype=jnp.float32)
    # LovaszSoftmax consumes class probabilities; softmax is applied upstream.
    probs = jax.nn.softmax(logits, axis=1)
    targets = jax.random.randint(k2, (N, H, W), 0, C, dtype=jnp.int32)

    # tile_p=128 exercises the multi-tile carry path even at this small P (=512).
    fn = jax.jit(functools.partial(lovasz_loss, tile_p=128))
    loss = fn(probs, targets)
    jax.block_until_ready(loss)

    ref = _lovasz_ref(probs, targets)
    assert jnp.allclose(loss, ref, atol=1e-4, rtol=1e-4), (float(loss), float(ref))
    print("KERNEL_OK")
</pallas_src>

<mosaic_0001>
module attributes {stable_mosaic.version = 11 : i64} {
  func.func private @main(%arg0: i32) attributes {dimension_semantics = [#tpu.dimension_semantics<core_parallel>], iteration_bounds = array<i64: 2>, tpu.core_type = #tpu.core_type<sc_scalar_subcore>, window_params = []} {
    return
  }
}

module attributes {stable_mosaic.version = 11 : i64} {
  func.func private @main(%arg0: i32) attributes {dimension_semantics = [#tpu.dimension_semantics<core_parallel>], iteration_bounds = array<i64: 2>, tpu.core_type = #tpu.core_type<sc_scalar_subcore>, window_params = []} {
    return
  }
}

module attributes {stable_mosaic.version = 11 : i64} {
  func.func @_lovasz_kernel(%arg0: i32, %arg1: memref<8x1xf32, #tpu.memory_space<vmem>>, %arg2: memref<8x128xf32, #tpu.memory_space<vmem>>, %arg3: memref<8x128xi32, #tpu.memory_space<vmem>>, %arg4: memref<8x1xf32, #tpu.memory_space<vmem>>, %arg5: memref<8x1xf32, #tpu.memory_space<vmem>>, %arg6: memref<8x1xf32, #tpu.memory_space<vmem>>) attributes {dimension_semantics = [#tpu.dimension_semantics<arbitrary>], iteration_bounds = array<i64: 4>, scalar_prefetch = 0 : i64, scratch_operands = 2 : i64, tpu.core_type = #tpu.core_type<tc>, window_params = [{pipeline_mode = #tpu.pipeline_mode<synchronous>, transform_indices = @transform_0, window_bounds = array<i64: 8, 1>}, {transform_indices = @transform_1, window_bounds = array<i64: 8, 128>}, {transform_indices = @transform_2, window_bounds = array<i64: 8, 128>}, {pipeline_mode = #tpu.pipeline_mode<synchronous>, transform_indices = @transform_3, window_bounds = array<i64: 8, 1>}]} {
    %c0_i32 = arith.constant 0 : i32
    %0 = arith.cmpi eq, %arg0, %c0_i32 : i32
    %1 = arith.extui %0 : i1 to i32
    %c0_i32_0 = arith.constant 0 : i32
    %2 = arith.cmpi ne, %1, %c0_i32_0 : i32
    scf.if %2 {
      %cst_36 = arith.constant 0.000000e+00 : f32
      %89 = vector.broadcast %cst_36 : f32 to vector<8x1xf32>
      %c0_37 = arith.constant 0 : index
      %c0_38 = arith.constant 0 : index
      %90 = vector.load %arg4[%c0_37, %c0_38] : memref<8x1xf32, #tpu.memory_space<vmem>>, vector<8x1xf32>
      tpu.vector_store %arg4[%c0_37, %c0_38], %89 {strides = array<i32>} : memref<8x1xf32, #tpu.memory_space<vmem>>, vector<8x1xf32>,
      %cst_39 = arith.constant 0.000000e+00 : f32
      %91 = vector.broadcast %cst_39 : f32 to vector<8x1xf32>
      %c0_40 = arith.constant 0 : index
      %c0_41 = arith.constant 0 : index
      %92 = vector.load %arg5[%c0_40, %c0_41] : memref<8x1xf32, #tpu.memory_space<vmem>>, vector<8x1xf32>
      tpu.vector_store %arg5[%c0_40, %c0_41], %91 {strides = array<i32>} : memref<8x1xf32, #tpu.memory_space<vmem>>, vector<8x1xf32>,
      %cst_42 = arith.constant 0.000000e+00 : f32
      %93 = vector.broadcast %cst_42 : f32 to vector<8x1xf32>
      %c0_43 = arith.constant 0 : index
      %c0_44 = arith.constant 0 : index
      %94 = vector.load %arg6[%c0_43, %c0_44] : memref<8x1xf32, #tpu.memory_space<vmem>>, vector<8x1xf32>
      tpu.vector_store %arg6[%c0_43, %c0_44], %93 {strides = array<i32>} : memref<8x1xf32, #tpu.memory_space<vmem>>, vector<8x1xf32>,
    } else {
    }
    %c0 = arith.constant 0 : index
    %c0_1 = arith.constant 0 : index
    %3 = vector.load %arg2[%c0, %c0_1] : memref<8x128xf32, #tpu.memory_space<vmem>>, vector<8x128xf32>
    %c0_2 = arith.constant 0 : index
    %c0_3 = arith.constant 0 : index
    %4 = vector.load %arg3[%c0_2, %c0_3] : memref<8x128xi32, #tpu.memory_space<vmem>>, vector<8x128xi32>
    %5 = tpu.iota {dimensions = array<i32: 0>} : vector<8x128xi32>
    %6 = tpu.iota {dimensions = array<i32: 1>} : vector<8x128xi32>
    %7 = arith.cmpi eq, %4, %5 : vector<8x128xi32>
    %8 = arith.extui %7 : vector<8x128xi1> to vector<8x128xi32>
    %9 = arith.sitofp %8 : vector<8x128xi32> to vector<8x128xf32>
    %c1_i32 = arith.constant 1 : i32
    %10 = vector.broadcast %c1_i32 : i32 to vector<8x128xi32>
    %11 = arith.cmpi sge, %6, %10 : vector<8x128xi32>
    %c1_i32_4 = arith.constant 1 : i32
    %12 = tpu.dynamic_rotate %9 by %c1_i32_4 dim 1 : vector<8x128xf32>, i32 -> vector<8x128xf32>
    %cst = arith.constant 0.000000e+00 : f32
    %13 = vector.broadcast %cst : f32 to vector<8x128xf32>
    %14 = arith.select %11, %12, %13 : vector<8x128xi1>, vector<8x128xf32>
    %15 = arith.addf %9, %14 : vector<8x128xf32>
    %c2_i32 = arith.constant 2 : i32
    %16 = vector.broadcast %c2_i32 : i32 to vector<8x128xi32>
    %17 = arith.cmpi sge, %6, %16 : vector<8x128xi32>
    %c2_i32_5 = arith.constant 2 : i32
    %18 = tpu.dynamic_rotate %15 by %c2_i32_5 dim 1 : vector<8x128xf32>, i32 -> vector<8x128xf32>
    %cst_6 = arith.constant 0.000000e+00 : f32
    %19 = vector.broadcast %cst_6 : f32 to vector<8x128xf32>
    %20 = arith.select %17, %18, %19 : vector<8x128xi1>, vector<8x128xf32>
    %21 = arith.addf %15, %20 : vector<8x128xf32>
    %c4_i32 = arith.constant 4 : i32
    %22 = vector.broadcast %c4_i32 : i32 to vector<8x128xi32>
    %23 = arith.cmpi sge, %6, %22 : vector<8x128xi32>
    %c4_i32_7 = arith.constant 4 : i32
    %24 = tpu.dynamic_rotate %21 by %c4_i32_7 dim 1 : vector<8x128xf32>, i32 -> vector<8x128xf32>
    %cst_8 = arith.constant 0.000000e+00 : f32
    %25 = vector.broadcast %cst_8 : f32 to vector<8x128xf32>
    %26 = arith.select %23, %24, %25 : vector<8x128xi1>, vector<8x128xf32>
    %27 = arith.addf %21, %26 : vector<8x128xf32>
    %c8_i32 = arith.constant 8 : i32
    %28 = vector.broadcast %c8_i32 : i32 to vector<8x128xi32>
    %29 = arith.cmpi sge, %6, %28 : vector<8x128xi32>
    %c8_i32_9 = arith.constant 8 : i32
    %30 = tpu.dynamic_rotate %27 by %c8_i32_9 dim 1 : vector<8x128xf32>, i32 -> vector<8x128xf32>
    %cst_10 = arith.constant 0.000000e+00 : f32
    %31 = vector.broadcast %cst_10 : f32 to vector<8x128xf32>
    %32 = arith.select %29, %30, %31 : vector<8x128xi1>, vector<8x128xf32>
    %33 = arith.addf %27, %32 : vector<8x128xf32>
    %c16_i32 = arith.constant 16 : i32
    %34 = vector.broadcast %c16_i32 : i32 to vector<8x128xi32>
    %35 = arith.cmpi sge, %6, %34 : vector<8x128xi32>
    %c16_i32_11 = arith.constant 16 : i32
    %36 = tpu.dynamic_rotate %33 by %c16_i32_11 dim 1 : vector<8x128xf32>, i32 -> vector<8x128xf32>
    %cst_12 = arith.constant 0.000000e+00 : f32
    %37 = vector.broadcast %cst_12 : f32 to vector<8x128xf32>
    %38 = arith.select %35, %36, %37 : vector<8x128xi1>, vector<8x128xf32>
    %39 = arith.addf %33, %38 : vector<8x128xf32>
    %c32_i32 = arith.constant 32 : i32
    %40 = vector.broadcast %c32_i32 : i32 to vector<8x128xi32>
    %41 = arith.cmpi sge, %6, %40 : vector<8x128xi32>
    %c32_i32_13 = arith.constant 32 : i32
    %42 = tpu.dynamic_rotate %39 by %c32_i32_13 dim 1 : vector<8x128xf32>, i32 -> vector<8x128xf32>
    %cst_14 = arith.constant 0.000000e+00 : f32
    %43 = vector.broadcast %cst_14 : f32 to vector<8x128xf32>
    %44 = arith.select %41, %42, %43 : vector<8x128xi1>, vector<8x128xf32>
    %45 = arith.addf %39, %44 : vector<8x128xf32>
    %c64_i32 = arith.constant 64 : i32
    %46 = vector.broadcast %c64_i32 : i32 to vector<8x128xi32>
    %47 = arith.cmpi sge, %6, %46 : vector<8x128xi32>
    %c64_i32_15 = arith.constant 64 : i32
    %48 = tpu.dynamic_rotate %45 by %c64_i32_15 dim 1 : vector<8x128xf32>, i32 -> vector<8x128xf32>
    %cst_16 = arith.constant 0.000000e+00 : f32
    %49 = vector.broadcast %cst_16 : f32 to vector<8x128xf32>
    %50 = arith.select %47, %48, %49 : vector<8x128xi1>, vector<8x128xf32>
    %51 = arith.addf %45, %50 : vector<8x128xf32>
    %c0_17 = arith.constant 0 : index
    %c0_18 = arith.constant 0 : index
    %52 = vector.load %arg5[%c0_17, %c0_18] : memref<8x1xf32, #tpu.memory_space<vmem>>, vector<8x1xf32>
    %53 = vector.broadcast %52 : vector<8x1xf32> to vector<8x128xf32>
    %54 = arith.addf %51, %53 : vector<8x128xf32>
    %c0_19 = arith.constant 0 : index
    %c0_20 = arith.constant 0 : index
    %55 = vector.load %arg6[%c0_19, %c0_20] : memref<8x1xf32, #tpu.memory_space<vmem>>, vector<8x1xf32>
    %c0_21 = arith.constant 0 : index
    %c0_22 = arith.constant 0 : index
    %56 = vector.load %arg1[%c0_21, %c0_22] : memref<8x1xf32, #tpu.memory_space<vmem>>, vector<8x1xf32>
    %c128_i32 = arith.constant 128 : i32
    %57 = arith.muli %arg0, %c128_i32 : i32
    %58 = arith.sitofp %57 : i32 to f32
    %59 = arith.sitofp %6 : vector<8x128xi32> to vector<8x128xf32>
    %60 = vector.broadcast %58 : f32 to vector<8x128xf32>
    %61 = arith.addf %60, %59 : vector<8x128xf32>
    %62 = vector.broadcast %56 : vector<8x1xf32> to vector<8x128xf32>
    %63 = arith.subf %62, %54 : vector<8x128xf32>
    %cst_23 = arith.constant 1.000000e+00 : f32
    %64 = vector.broadcast %cst_23 : f32 to vector<8x128xf32>
    %65 = arith.addf %61, %64 : vector<8x128xf32>
    %66 = vector.broadcast %56 : vector<8x1xf32> to vector<8x128xf32>
    %67 = arith.addf %66, %65 : vector<8x128xf32>
    %68 = arith.subf %67, %54 : vector<8x128xf32>
    %69 = arith.divf %63, %68 : vector<8x128xf32>
    %cst_24 = arith.constant 1.000000e+00 : f32
    %70 = vector.broadcast %cst_24 : f32 to vector<8x128xf32>
    %71 = arith.subf %70, %69 : vector<8x128xf32>
    %c1_i32_25 = arith.constant 1 : i32
    %72 = tpu.dynamic_rotate %71 by %c1_i32_25 dim 1 : vector<8x128xf32>, i32 -> vector<8x128xf32>
    %c0_i32_26 = arith.constant 0 : i32
    %73 = vector.broadcast %c0_i32_26 : i32 to vector<8x128xi32>
    %74 = arith.cmpi eq, %6, %73 : vector<8x128xi32>
    %75 = vector.shape_cast %55 : vector<8x1xf32> to vector<8x1xf32>
    %76 = vector.broadcast %75 : vector<8x1xf32> to vector<8x128xf32>
    %77 = arith.select %74, %76, %72 : vector<8x128xi1>, vector<8x128xf32>
    %78 = arith.subf %71, %77 : vector<8x128xf32>
    %c0_27 = arith.constant 0 : index
    %c0_28 = arith.constant 0 : index
    %79 = vector.load %arg4[%c0_27, %c0_28] : memref<8x1xf32, #tpu.memory_space<vmem>>, vector<8x1xf32>
    %80 = arith.mulf %3, %78 : vector<8x128xf32>
    %cst_29 = arith.constant dense<0.000000e+00> : vector<8xf32>
    %81 = vector.multi_reduction <add>, %80, %cst_29 [1] : vector<8x128xf32> to vector<8xf32>
    %82 = vector.shape_cast %81 : vector<8xf32> to vector<8x1xf32>
    %83 = arith.addf %79, %82 : vector<8x1xf32>
    %c0_30 = arith.constant 0 : index
    %c0_31 = arith.constant 0 : index
    %84 = vector.load %arg4[%c0_30, %c0_31] : memref<8x1xf32, #tpu.memory_space<vmem>>, vector<8x1xf32>
    tpu.vector_store %arg4[%c0_30, %c0_31], %83 {strides = array<i32>} : memref<8x1xf32, #tpu.memory_space<vmem>>, vector<8x1xf32>,
    %85 = vector.extract_strided_slice %54 {offsets = [0, 127], sizes = [8, 1], strides = [1, 1]} : vector<8x128xf32> to vector<8x1xf32>
    %c0_32 = arith.constant 0 : index
    %c0_33 = arith.constant 0 : index
    %86 = vector.load %arg5[%c0_32, %c0_33] : memref<8x1xf32, #tpu.memory_space<vmem>>, vector<8x1xf32>
    tpu.vector_store %arg5[%c0_32, %c0_33], %85 {strides = array<i32>} : memref<8x1xf32, #tpu.memory_space<vmem>>, vector<8x1xf32>,
    %87 = vector.extract_strided_slice %71 {offsets = [0, 127], sizes = [8, 1], strides = [1, 1]} : vector<8x128xf32> to vector<8x1xf32>
    %c0_34 = arith.constant 0 : index
    %c0_35 = arith.constant 0 : index
    %88 = vector.load %arg6[%c0_34, %c0_35] : memref<8x1xf32, #tpu.memory_space<vmem>>, vector<8x1xf32>
    tpu.vector_store %arg6[%c0_34, %c0_35], %87 {strides = array<i32>} : memref<8x1xf32, #tpu.memory_space<vmem>>, vector<8x1xf32>,
    return
  }
  func.func @transform_0(%arg0: i32) -> (i32, i32) {
    %c0_i32 = arith.constant 0 : i32
    %c0_i32_0 = arith.constant 0 : i32
    %c0_i32_1 = arith.constant 0 : i32
    return %c0_i32, %c0_i32_0 : i32, i32
  }
  func.func @transform_1(%arg0: i32) -> (i32, i32) {
    %c0_i32 = arith.constant 0 : i32
    %c0_i32_0 = arith.constant 0 : i32
    return %c0_i32, %arg0 : i32, i32
  }
  func.func @transform_2(%arg0: i32) -> (i32, i32) {
    %c0_i32 = arith.constant 0 : i32
    %c0_i32_0 = arith.constant 0 : i32
    return %c0_i32, %arg0 : i32, i32
  }
  func.func @transform_3(%arg0: i32) -> (i32, i32) {
    %c0_i32 = arith.constant 0 : i32
    %c0_i32_0 = arith.constant 0 : i32
    %c0_i32_1 = arith.constant 0 : i32
    return %c0_i32, %c0_i32_0 : i32, i32
  }
}

</mosaic_0001>

<bundles_post_ra>
// kernel: eq.12
= control target key start
LH: loop header
LB: loop body
LE: loop exit
PB: predicated region body
PF: predicated region fallthrough
CT: control target
= control target key end

     0   :  { %2 = vsyncpa [#allocation1], 0  ;;  %s96_s6 = smov [#allocation0]   ;;  %s129_s0 = inlined_call_operand.hbm [shape: s32[2,16,16], index: 0, kind: input, shape index: {}]   ;;  %s130_s1 = inlined_call_operand.vmem [shape: s32[512], index: 1, kind: output, shape index: {}]  }
   0x1   :  { %s7_s7 = sshll.u32 %s96_s6, 4  ;;  %s72_s10 = scalar_lea.hbm %s129_s0, 512  ;;  %s8_s7 = int_to_ptr.vmem [resolvable:$true] %s7_s7 }
   0x2   :  { %p73_p0 = scmp.ne.s32.totalorder %s129_s0, %s72_s10  ;;  %p76_p1 = scmp.lt.u32.totalorder %s72_s10, %s129_s0 }
   0x4   :  { %p78_p2 = pnand %p76_p1, %p73_p0 }
   0x6   :  { %81 = shalt.err (!%p78_p2)
}
   0x7   :  { %s82_s15 = scalar_lea.vmem %s8_s7, 512  ;;  %p87_p4 = scmp.lt.s32.totalorder %s8_s7, %s8_s7 }
   0x8   :  { %p83_p3 = scmp.ne.s32.totalorder %s8_s7, %s82_s15  ;;  %p88_p5 = scmp.lt.s32.totalorder %s82_s15, %s82_s15 }
   0xa   :  { %p89_p6 = por %p88_p5, %p87_p4 }
   0xc   :  { %p90_p7 = pnand %p89_p6, %p83_p3 }
   0xe   :  { %93 = shalt.err (!%p90_p7)
}
   0xf   :  { %10 = dma.hbm_to_vmem [thread:$0]  %s129_s0, 512, %s8_s7, [#allocation1]  }
  0x10   :  { %94 = dma.done.wait [#allocation1], 512  }
  0x11   :  { %95 = vsyncadd [#allocation1], 4294966784  ;;  %v16_v0 = vld [vmem:[#allocation0 + $0x7] ss:$8 sm:$0xf]   ;;  %s97_s0 = smov 112  }
  0x12   :  { %v28_v1 = vld [vmem:[#allocation0 + $0x5] ss:$8 sm:$0xf]   ;;  %17 = vrot.lane.b32.xlu0 %v16_v0, %s97_s0  ;;  %s98_s18 = smov 80   ;;  %vm13_vm0 = vcmask 130048   ;;  %s99_s19 = smov 96  }
  0x13   :  { %29 = vrot.lane.b32.xlu1 %v28_v1, %s98_s18  ;;  %v22_v2 = vld [vmem:[#allocation0 + $0x6] ss:$8 sm:$0xf]   ;;  %v34_v3 = vld [vmem:[#allocation0 + $0x4] ss:$8 sm:$0xf]  }
  0x14   :  { %v12_v4 = vld [vmem:[#allocation0] ss:$8 sm:$0xf]   ;;  %s100_s20 = smov 64   ;;  %s101_s21 = smov 48   ;;  %vm19_vm1 = vcmask 1048448  }
  0x15   :  { %14 = vst.msk [vmem:[#allocation2] sm:$0xf] %vm13_vm0, %v12_v4   ;;  %v40_v5 = vld [vmem:[#allocation0 + $0x3] ss:$8 sm:$0xf]   ;;  %s102_s22 = smov 32  }
  0x16   :  { %23 = vrot.lane.b32.xlu0 %v22_v2, %s99_s19  ;;  %v46_v6 = vld [vmem:[#allocation0 + $0x2] ss:$8 sm:$0xf]   ;;  %v52_v7 = vld [vmem:[#allocation0 + $0x1] ss:$8 sm:$0xf]  }
  0x17   :  { %35 = vrot.lane.b32.xlu1 %v34_v3, %s100_s20  ;;  %s103_s23 = smov 16   ;;  %vm25_vm2 = vcmask 917248   ;;  %vm31_vm3 = vcmask 786048   ;;  %vm37_vm4 = vcmask 654848   ;;  %vm43_vm5 = vcmask 523648  }
  0x18   :  { %vm49_vm6 = vcmask 392448   ;;  %vm55_vm7 = vcmask 261248  }
  0x1a   :  { %41 = vrot.lane.b32.xlu0 %v40_v5, %s101_s21 }
  0x1b   :  { %47 = vrot.lane.b32.xlu1 %v46_v6, %s102_s22 }
  0x1e   :  { %53 = vrot.lane.b32.xlu0 %v52_v7, %s103_s23 }
  0x84   :  { %v18_v8 = vpop.permute.xlu0 %17  }
  0x85   :  { %v30_v9 = vpop.permute.xlu1 %29   ;;  %20 = vst.msk [vmem:[#allocation2] sm:$0xf] %vm19_vm1, %v18_v8  }
  0x88   :  { %v24_v10 = vpop.permute.xlu0 %23  }
  0x89   :  { %v36_v11 = vpop.permute.xlu1 %35   ;;  %26 = vst.msk [vmem:[#allocation2] sm:$0xf] %vm25_vm2, %v24_v10  }
  0x8a   :  { %32 = vst.msk [vmem:[#allocation2] sm:$0xf] %vm31_vm3, %v30_v9  }
  0x8b   :  { %38 = vst.msk [vmem:[#allocation2] sm:$0xf] %vm37_vm4, %v36_v11  }
  0x8c   :  { %v42_v12 = vpop.permute.xlu0 %41  }
  0x8d   :  { %v48_v13 = vpop.permute.xlu1 %47   ;;  %44 = vst.msk [vmem:[#allocation2] sm:$0xf] %vm43_vm5, %v42_v12  }
  0x8e   :  { %50 = vst.msk [vmem:[#allocation2] sm:$0xf] %vm49_vm6, %v48_v13  }
  0x90   :  { %v54_v14 = vpop.permute.xlu0 %53  }
  0x91   :  { %56 = vst.msk [vmem:[#allocation2] sm:$0xf] %vm55_vm7, %v54_v14  }
  0x98   :  { %v60_v15 = vld [vmem:[#allocation2] sm:$0xf] }
  0x99   :  { %62 = vst [vmem:[%s130_s1] sm:$0xf] %v60_v15 }
  0x9a   :  { %63 = vsyncpa [#allocation1], 1 }

// kernel: lovasz_loss.1
= control target key start
LH: loop header
LB: loop body
LE: loop exit
PB: predicated region body
PF: predicated region fallthrough
CT: control target
= control target key end

     0   :  { %s386_s12 = smov 0   ;;  %s439_s0 = inlined_call_operand.vmem [shape: f32[8,1], index: 0, kind: input, shape index: {}]   ;;  %s440_s1 = inlined_call_operand.vmem [shape: f32[8,512], index: 1, kind: input, shape index: {}]   ;;  %s441_s2 = inlined_call_operand.vmem [shape: s32[8,512], index: 2, kind: input, shape index: {}]   ;;  %s442_s3 = inlined_call_operand.vmem [shape: f32[8,1], index: 3, kind: output, shape index: {}]  }
   0x1 LB: > { %s392_s13 = sadd.s32 4294967295, %s354_s12   ;;  %p318_p0 = scmp.ge.s32.totalorder %s354_s12, 1  ;;  %s354_s12 = sphi %s386_s12, %s13_s12  }
   0x2   : > { %p140_p1 = scmp.lt.s32.totalorder %s354_s12, 5 }
   0x4   : > { %p141_p2 = pnand %p318_p0, %p140_p1 }
   0x5   : > { %p162_p3 = scmp.lt.s32.totalorder (!%p141_p2), %s392_s13, 3  ;;  %p321_p4 = scmp.ne.s32.totalorder (!%p141_p2), %s392_s13, 0 }
   0x6   : > { %144 = sbr.rel (%p141_p2) target bundleno = 1137 (0x471), region = 32 }
   0xd   : > { %s163_s14 = scalar_select %p162_p3, %s392_s13, 3 }
   0xe   : > { %173 = sbr.rel (%p321_p4) target bundleno = 21 (0x15), region = 36  ;;  %vm174_vm0 = vcmask (!%p321_p4), 7168   ;;  %v356_v0 = vmov (!%p321_p4), 0.0  }
   0xf   : > { %s319_s15 = sshll.u32 %s163_s14, 3  ;;  %175 = vst.msk [vmem:[%s442_s3] sm:$0xff] (!%p321_p4), %vm174_vm0, %v356_v0  ;;  %176 = vst.msk [vmem:[#allocation2] sm:$0xff] (!%p321_p4), %vm174_vm0, %v356_v0 }
  0x10   : > { %s401_s18 = scalar_lea.vmem %s440_s1, %s319_s15  ;;  %s169_s21 = scalar_lea.vmem %s441_s2, %s319_s15  ;;  %177 = vst.msk [vmem:[#allocation3] sm:$0xff] (!%p321_p4), %vm174_vm0, %v356_v0 }
  0x15 PF: > { %v180_v1 = vlaneseq  ;;  %v179_v2 = vld [vmem:[%s169_s21] sm:$0xff]  ;;  %v357_v4 = vmov 0.0   ;;  %s358_s24 = smov 1   ;;  %s359_s25 = smov 2   ;;  %v362_v16 = vmov 0   ;;  %vm263_vm10 = vcmask 7168  }
  0x16   : > { %s360_s26 = smov 4   ;;  %s361_s27 = smov 8   ;;  %345 = vset.pattern.permute.xlu1 %v362_v16  ;;  %344 = vset.pattern.permute.xlu0 %v362_v16  ;;  %v222_v20 = vld [vmem:[#allocation2] sm:$0xff] }
  0x17   : > { %v181_v3 = vshrl.u32 %v180_v1, 7  ;;  %v411_v6 = vand.u32 127, %v180_v1  ;;  %s363_s28 = smov 16   ;;  %v229_v21 = vld [vmem:[#allocation3] sm:$0xff]  ;;  %s364_s29 = smov 32   ;;  %v230_v25 = vld [vmem:[%s439_s0] sm:$0xff] }
  0x18   : > { %s365_s5 = smov 64   ;;  %s323_s6 = sshll.u32 %s392_s13, 7  ;;  %v178_v48 = vld [vmem:[%s401_s18] sm:$0xff] }
  0x19   : > { %vm184_vm1 = vcmp.eq.s32.totalorder %v179_v2, %v181_v3  ;;  %vm187_vm2 = vcmp.ge.s32.totalorder %v411_v6, 1  ;;  %vm192_vm3 = vcmp.ge.s32.totalorder %v411_v6, 2  ;;  %vm197_vm4 = vcmp.ge.s32.totalorder %v411_v6, 4  ;;  %s232_s7 = scvt.s32.f32 %s323_s6  ;;  %v258_v53 = vld [vmem:[%s442_s3] sm:$0xff] }
  0x1a   : > { %v322_v5 = vsel %vm184_vm1, 1.0, %v357_v4  ;;  %vm202_vm5 = vcmp.ge.s32.totalorder %v411_v6, 8  ;;  %vm207_vm6 = vcmp.ge.s32.totalorder %v411_v6, 16  ;;  %vm212_vm7 = vcmp.ge.s32.totalorder %v411_v6, 32 }
  0x1b   : > { %188 = vrot.lane.b32.xlu0 %v322_v5, %s358_s24  ;;  %v233_v29 = vcvt.s32.f32 %v411_v6  ;;  %v234_v30 = vstv %s232_s7  ;;  %vm217_vm8 = vcmp.ge.s32.totalorder %v411_v6, 64  ;;  %vm250_vm9 = vcmp.eq.s32.totalorder %v411_v6, 0 }
  0x1d   : > { %v235_v32 = vadd.f32 %v234_v30, %v233_v29 }
  0x1f   : > { %v242_v33 = vadd.f32 1.0, %v235_v32 }
  0x8d   : > { %v189_v7 = vpop.permute.xlu0 %188 }
  0x8e   : > { %v190_v8 = vsel %vm187_vm2, %v189_v7, 0.0 }
  0x8f   : > { %v191_v9 = vadd.f32 %v322_v5, %v190_v8 }
  0x91   : > { %193 = vrot.lane.b32.xlu0 %v191_v9, %s359_s25 }
 0x103   : > { %v194_v10 = vpop.permute.xlu0 %193 }
 0x104   : > { %v195_v11 = vsel %vm192_vm3, %v194_v10, 0.0 }
 0x105   : > { %v196_v12 = vadd.f32 %v195_v11, %v191_v9 }
 0x107   : > { %198 = vrot.lane.b32.xlu1 %v196_v12, %s360_s26 }
 0x179   : > { %v199_v13 = vpop.permute.xlu1 %198 }
 0x17a   : > { %v200_v14 = vsel %vm197_vm4, %v199_v13, 0.0 }
 0x17b   : > { %v201_v15 = vadd.f32 %v200_v14, %v196_v12 }
 0x17d   : > { %203 = vrot.lane.b32.xlu1 %v201_v15, %s361_s27 }
 0x1ef   : > { %v204_v17 = vpop.permute.xlu1 %203 }
 0x1f0   : > { %v205_v18 = vsel %vm202_vm5, %v204_v17, 0.0 }
 0x1f1   : > { %v206_v19 = vadd.f32 %v205_v18, %v201_v15 }
 0x1f3   : > { %208 = vrot.lane.b32.xlu0 %v206_v19, %s363_s28 }
 0x1f7   : > { %225 = vperm.xlu0 %344, %v222_v20  }
 0x1fb   : > { %253 = vperm.xlu0 %344, %v229_v21  }
 0x265   : > { %v209_v22 = vpop.permute.xlu0 %208 }
 0x266   : > { %v210_v23 = vsel %vm207_vm6, %v209_v22, 0.0 }
 0x267   : > { %v211_v24 = vadd.f32 %v210_v23, %v206_v19 }
 0x269   : > { %213 = vrot.lane.b32.xlu1 %v211_v24, %s364_s29 }
 0x26d   : > { %238 = vperm.xlu1 %345, %v230_v25  }
 0x276   : > { %v226_v37 = vpop.permute.xlu0 %225 }
 0x27a   : > { %v254_v45 = vpop.permute.xlu0 %253 }
 0x2db   : > { %v214_v26 = vpop.permute.xlu1 %213 }
 0x2dc   : > { %v215_v27 = vsel %vm212_vm7, %v214_v26, 0.0 }
 0x2dd   : > { %v216_v28 = vadd.f32 %v215_v27, %v211_v24 }
 0x2df   : > { %218 = vrot.lane.b32.xlu1 %v216_v28, %s365_s5 }
 0x2ec   : > { %v239_v31 = vpop.permute.xlu1 %238 }
 0x2ed   : > { %v243_v38 = vadd.f32 %v242_v33, %v239_v31 }
 0x351   : > { %v219_v34 = vpop.permute.xlu1 %218 }
 0x352   : > { %v220_v35 = vsel %vm217_vm8, %v219_v34, 0.0 }
 0x353   : > { %v221_v36 = vadd.f32 %v220_v35, %v216_v28 }
 0x355   : > { %v228_v39 = vadd.f32 %v226_v37, %v221_v36 }
 0x357   : > { %v244_v40 = vsub.f32 %v243_v38, %v228_v39  ;;  %v241_v41 = vsub.f32 %v239_v31, %v228_v39 }
 0x359   : > { %346 = vrcp.f32 %v244_v40 }
 0x363   : > { %v347_v42 = vpop.eup %346 }
 0x364   : > { %v246_v43 = vmul.f32 %v347_v42, %v241_v41 }
 0x366   : > { %v247_v44 = vsub.f32 1.0, %v246_v43 }
 0x368   : > { %248 = vrot.lane.b32.xlu1 %v247_v44, %s358_s24 }
 0x36c   : > { %266 = vrot.lane.b32.xlu1 %v228_v39, %s358_s24 }
 0x370   : > { %271 = vrot.lane.b32.xlu1 %v247_v44, %s358_s24 }
 0x3da   : > { %v249_v46 = vpop.permute.xlu1 %248 }
 0x3db   : > { %v256_v47 = vsel %vm250_vm9, %v254_v45, %v249_v46 }
 0x3dc   : > { %v257_v49 = vsub.f32 %v247_v44, %v256_v47 }
 0x3de   : > { %v267_v50 = vpop.permute.xlu1 %266  ;;  %v259_v51 = vmul.f32 %v257_v49, %v178_v48 }
 0x3df   : > { %269 = vst.msk [vmem:[#allocation2] sm:$0xff] %vm263_vm10, %v267_v50 }
 0x3e0   : > { %260 = vadd.xlane.f32.xlu0 %v259_v51 }
 0x3e2   : > { %v272_v52 = vpop.permute.xlu1 %271 }
 0x3e3   : > { %274 = vst.msk [vmem:[#allocation3] sm:$0xff] %vm263_vm10, %v272_v52 }
 0x46d   : > { %v261_v54 = vpop.xlane.xlu0 %260 }
 0x46e   : > { %v262_v55 = vadd.f32 %v261_v54, %v258_v53 }
 0x470   : > { %264 = vst.msk [vmem:[%s442_s3] sm:$0xff] %vm263_vm10, %v262_v55 }
 0x471 PF: > { %s13_s12 = sadd.s32 1, %s354_s12  }
 0x472   : > { %p10_p5 = scmp.ge.s32.totalorder %s13_s12, 6  }
 0x474   :  { %12 = sbr.rel (!%p10_p5) target bundleno = 1 (0x1), region = 65 }

</bundles_post_ra>
